<compile_context>
chip_gen: v5e
topology: v5e:2x2
jax: 0.10.0
libtpu: 0.0.40
codegen_flags: <defaults>
</compile_context>

<pallas_src>
import functools

import jax
import jax.numpy as jnp
from jax.experimental import pallas as pl
from jax.experimental.pallas import tpu as pltpu


def _round_up(x, m):
    return ((x + m - 1) // m) * m


# ----------------------------------------------------------------------------- planning
def _physical_vmem_bytes():
    try:
        return int(pltpu.get_tpu_info().vmem_capacity_bytes)
    except Exception:
        return 64 * 1024 * 1024  # conservative default = v7x per-TC VMEM


def _peak_vmem_bytes(tb, tk, dc, x_itemsize, n_buf):
    x_bufs = n_buf * tb * tk * x_itemsize            # streamed x blocks
    w_bufs = 2 * 8 * _round_up(tk, 128) * 4          # (1, TK) row, (8,128)-padded, 2 bufs
    prod = tb * dc * 4                               # f32 product sub-chunk
    out_bufs = 2 * 8 * tb * 4                        # (1, TB) lane-dense out, 2 bufs
    acc = 8 * tb * 4                                 # (1, TB) f32 accumulator scratch
    return x_bufs + w_bufs + prod + out_bufs + acc


def _plan_tiles(batch, d, x_itemsize, tb_user=None):
    vmem_phys = _physical_vmem_bytes()
    vmem_limit = min((vmem_phys * 3) // 4, 96 * 1024 * 1024)   # 48 MiB v7x, 96 MiB v5e/v6e
    margin = 4 * 1024 * 1024

    # Reduction (feature) tile: full D when small, else 128-aligned 512-wide K blocks.
    tk = d if d <= 1024 else 512
    # In-kernel MAC sub-chunk (keeps the f32 product temporary small).
    dc = 256 if tk % 256 == 0 else tk

    tb_cap = min(8192, _round_up(batch, 128))
    if tb_user is not None:
        tb = max(128, _round_up(int(tb_user), 128))   # validate user tb: multiple of 128
    else:
        tb = tb_cap
    target_block = 8 * 1024 * 1024                    # ~8 MiB x blocks ≈ HBM-roofline sweet spot

    while tb > 128 and (tb * tk * x_itemsize > target_block
                        or _peak_vmem_bytes(tb, tk, dc, x_itemsize, 2) > vmem_limit - margin):
        tb = max(128, ((tb // 2) // 128) * 128)

    n_buf = 2
    n_steps = pl.cdiv(batch, tb) * pl.cdiv(d, tk)
    if (tb * tk * x_itemsize < (1 << 20) and n_steps >= 4
            and _peak_vmem_bytes(tb, tk, dc, x_itemsize, 3) <= vmem_limit - margin):
        n_buf = 3                                     # small blocks: deepen the pipeline

    return tb, tk, dc, n_buf, vmem_limit


# ------------------------------------------------------------------------------- kernel
def _make_kernel(d_total, tk, dc, nk):
    n_sub = tk // dc
    needs_mask = (d_total % tk) != 0   # ragged last K block -> mask stale columns

    def kernel(x_ref, w_ref, b_ref, o_ref, acc_ref):
        # x_ref: (TB, TK) VMEM  -- streamed batch x feature block
        # w_ref: (1, TK)  VMEM  -- PyTorch nn.Linear weight row slice
        # b_ref: (1, 1)   SMEM  -- scalar bias
        # o_ref: (1, TB)  VMEM  -- lane-dense output tile (revisited across K)
        # acc_ref: (1, TB) f32 VMEM scratch accumulator
        k = pl.program_id(1)

        @pl.when(k == 0)
        def _init():
            acc_ref[...] = jnp.zeros_like(acc_ref)

        partial = None
        for c in range(n_sub):  # chunked MAC: never materialize a full (TB, TK) product
            xs = x_ref[:, c * dc:(c + 1) * dc].astype(jnp.float32)
            ws = w_ref[:, c * dc:(c + 1) * dc].astype(jnp.float32)
            prod = xs * ws                                     # VPU broadcast multiply
            if needs_mask:
                col = (k * tk + c * dc
                       + jax.lax.broadcasted_iota(jnp.int32, prod.shape, 1))
                prod = jnp.where(col < d_total, prod, 0.0)     # zero stale K columns
            s = jnp.sum(prod, axis=1)                          # XLU lane reduce -> (TB,)
            partial = s if partial is None else partial + s

        acc_ref[...] += partial[None, :]

        @pl.when(k == nk - 1)
        def _finalize():
            z = acc_ref[...] + b_ref[0, 0]
            o_ref[...] = jax.nn.sigmoid(z).astype(o_ref.dtype)

    return kernel


# ------------------------------------------------------------------------------ wrapper
@functools.partial(jax.jit, static_argnames=("tb",))
def perceptron_forward(x, w, b, *, tb=None):
    """x: (B, D) f32/bf16, w: (1, D) f32 (PyTorch layout), b: (1,) f32 -> (B,) (() if B==1)."""
    B, D = x.shape
    TB, TK, DC, n_buf, vmem_limit = _plan_tiles(B, D, x.dtype.itemsize, tb)
    nb = pl.cdiv(B, TB)
    nk = pl.cdiv(D, TK)

    kernel = _make_kernel(D, TK, DC, nk)
    b2 = b.reshape(1, 1)

    x_spec = pl.BlockSpec((TB, TK), lambda i, k: (i, k))
    if n_buf == 3 and hasattr(pl, "Buffered"):
        try:
            x_spec = pl.BlockSpec((TB, TK), lambda i, k: (i, k),
                                  pipeline_mode=pl.Buffered(3))
        except TypeError:
            pass  # older jax: fall back to default double-buffering

    out = pl.pallas_call(
        kernel,
        out_shape=jax.ShapeDtypeStruct((1, B), jnp.float32),
        grid=(nb, nk),
        in_specs=[
            x_spec,                                              # x: streamed, pipelined
            pl.BlockSpec((1, TK), lambda i, k: (0, k)),          # w: tiny row slice in VMEM
            pl.BlockSpec(memory_space=pltpu.MemorySpace.SMEM),   # b: scalar in SMEM
        ],
        out_specs=pl.BlockSpec((1, TB), lambda i, k: (0, i)),    # lane-dense output slab
        scratch_shapes=[pltpu.VMEM((1, TB), jnp.float32)],       # K-reduction accumulator
        compiler_params=pltpu.CompilerParams(
            dimension_semantics=("parallel", "arbitrary"),       # batch parallel, K reduction
            vmem_limit_bytes=int(vmem_limit),
        ),
    )(x, w, b2)

    y = out[0, :]
    # Match torch .squeeze(): a batch of 1 squeezes all the way to a 0-d scalar.
    return y.reshape(()) if B == 1 else y


def _reference(x, w, b):
    # Pure elementwise f32 reference (identical math to nn.Linear(D,1) + sigmoid + squeeze),
    # avoids TPU matmul-precision ambiguity in the check.
    return jax.nn.sigmoid(jnp.sum(x.astype(jnp.float32) * w[0], axis=-1) + b[0])


if __name__ == "__main__":
    key = jax.random.PRNGKey(0)

    def make_inputs(key, batch, input_dim):
        kx, kw, kb = jax.random.split(key, 3)
        bound = 1.0 / jnp.sqrt(jnp.float32(input_dim))
        w = jax.random.uniform(kw, (1, input_dim), jnp.float32, -bound, bound)
        b = jax.random.uniform(kb, (1,), jnp.float32, -bound, bound)
        x = jax.random.normal(kx, (batch, input_dim), jnp.float32)
        return x, w, b

    # 1) Small shape matching the module's intended use (batch, num_features).
    x, w, b = make_inputs(key, 8, 32)
    y = perceptron_forward(x, w, b)
    jax.block_until_ready(y)
    y_ref = _reference(x, w, b)
    assert y.shape == (8,), y.shape
    assert jnp.allclose(y, y_ref, atol=1e-5, rtol=1e-5), float(jnp.max(jnp.abs(y - y_ref)))

    # 2) Ragged batch (no wrapper pad; partial last batch block is masked by Pallas).
    k2 = jax.random.fold_in(key, 1)
    x2, w2, b2 = make_inputs(k2, 300, 32)
    y2 = perceptron_forward(x2, w2, b2, tb=128)
    jax.block_until_ready(y2)
    assert y2.shape == (300,), y2.shape
    assert jnp.allclose(y2, _reference(x2, w2, b2), atol=1e-5, rtol=1e-5)

    # 3) Large, non-multiple-of-512 feature dim: exercises the K grid axis + accumulator
    #    + in-kernel ragged-column mask.
    k3 = jax.random.fold_in(key, 2)
    x3, w3, b3 = make_inputs(k3, 64, 1152)
    y3 = perceptron_forward(x3, w3, b3)
    jax.block_until_ready(y3)
    assert y3.shape == (64,), y3.shape
    assert jnp.allclose(y3, _reference(x3, w3, b3), atol=2e-5, rtol=2e-5)

    print("KERNEL_OK")
</pallas_src>

<mosaic_0001>
module attributes {stable_mosaic.version = 11 : i64} {
  func.func @kernel(%arg0: i32, %arg1: i32, %arg2: memref<128x32xf32, #tpu.memory_space<vmem>>, %arg3: memref<1x32xf32, #tpu.memory_space<vmem>>, %arg4: memref<1x1xf32, #tpu.memory_space<smem>>, %arg5: memref<1x128xf32, #tpu.memory_space<vmem>>, %arg6: memref<1x128xf32, #tpu.memory_space<vmem>>) attributes {dimension_semantics = [#tpu.dimension_semantics<parallel>, #tpu.dimension_semantics<arbitrary>], iteration_bounds = array<i64: 1, 1>, scalar_prefetch = 0 : i64, scratch_operands = 1 : i64, tpu.core_type = #tpu.core_type<tc>, window_params = [{transform_indices = @transform_0, window_bounds = array<i64: 128, 32>}, {transform_indices = @transform_1, window_bounds = array<i64: 1, 32>}, {transform_indices = @transform_2, window_bounds = array<i64: 1, 1>}, {transform_indices = @transform_3, window_bounds = array<i64: 1, 128>}]} {
    %c0_i32 = arith.constant 0 : i32
    %0 = arith.cmpi eq, %arg1, %c0_i32 : i32
    %1 = arith.extui %0 : i1 to i32
    %c0_i32_0 = arith.constant 0 : i32
    %2 = arith.cmpi ne, %1, %c0_i32_0 : i32
    scf.if %2 {
      %cst_10 = arith.constant 0.000000e+00 : f32
      %15 = vector.broadcast %cst_10 : f32 to vector<1x128xf32>
      %c0_11 = arith.constant 0 : index
      %c0_12 = arith.constant 0 : index
      %16 = vector.load %arg6[%c0_11, %c0_12] : memref<1x128xf32, #tpu.memory_space<vmem>>, vector<1x128xf32>
      tpu.vector_store %arg6[%c0_11, %c0_12], %15 {strides = array<i32>} : memref<1x128xf32, #tpu.memory_space<vmem>>, vector<1x128xf32>,
    } else {
    }
    %c0 = arith.constant 0 : index
    %c0_1 = arith.constant 0 : index
    %3 = vector.load %arg2[%c0, %c0_1] : memref<128x32xf32, #tpu.memory_space<vmem>>, vector<128x32xf32>
    %c0_2 = arith.constant 0 : index
    %c0_3 = arith.constant 0 : index
    %4 = vector.load %arg3[%c0_2, %c0_3] : memref<1x32xf32, #tpu.memory_space<vmem>>, vector<1x32xf32>
    %5 = vector.broadcast %4 : vector<1x32xf32> to vector<128x32xf32>
    %6 = arith.mulf %3, %5 : vector<128x32xf32>
    %cst = arith.constant dense<0.000000e+00> : vector<128xf32>
    %7 = vector.multi_reduction <add>, %6, %cst [1] : vector<128x32xf32> to vector<128xf32>
    %c0_4 = arith.constant 0 : index
    %c0_5 = arith.constant 0 : index
    %8 = vector.load %arg6[%c0_4, %c0_5] : memref<1x128xf32, #tpu.memory_space<vmem>>, vector<1x128xf32>
    %9 = vector.shape_cast %7 : vector<128xf32> to vector<1x128xf32>
    %10 = arith.addf %8, %9 : vector<1x128xf32>
    %c0_6 = arith.constant 0 : index
    %c0_7 = arith.constant 0 : index
    %11 = vector.load %arg6[%c0_6, %c0_7] : memref<1x128xf32, #tpu.memory_space<vmem>>, vector<1x128xf32>
    tpu.vector_store %arg6[%c0_6, %c0_7], %10 {strides = array<i32>} : memref<1x128xf32, #tpu.memory_space<vmem>>, vector<1x128xf32>,
    %c0_i32_8 = arith.constant 0 : i32
    %12 = arith.cmpi eq, %arg1, %c0_i32_8 : i32
    %13 = arith.extui %12 : i1 to i32
    %c0_i32_9 = arith.constant 0 : i32
    %14 = arith.cmpi ne, %13, %c0_i32_9 : i32
    scf.if %14 {
      %c0_10 = arith.constant 0 : index
      %c0_11 = arith.constant 0 : index
      %15 = vector.load %arg6[%c0_10, %c0_11] : memref<1x128xf32, #tpu.memory_space<vmem>>, vector<1x128xf32>
      %c0_12 = arith.constant 0 : index
      %c0_13 = arith.constant 0 : index
      %16 = memref.load %arg4[%c0_12, %c0_13] : memref<1x1xf32, #tpu.memory_space<smem>>
      %17 = vector.broadcast %16 : f32 to vector<1x128xf32>
      %18 = arith.addf %15, %17 : vector<1x128xf32>
      %19 = arith.negf %18 : vector<1x128xf32>
      %20 = math.exp %19 : vector<1x128xf32>
      %cst_14 = arith.constant 1.000000e+00 : f32
      %21 = vector.broadcast %cst_14 : f32 to vector<1x128xf32>
      %22 = arith.addf %21, %20 : vector<1x128xf32>
      %23 = arith.divf %21, %22 : vector<1x128xf32>
      %c0_15 = arith.constant 0 : index
      %c0_16 = arith.constant 0 : index
      %24 = vector.load %arg5[%c0_15, %c0_16] : memref<1x128xf32, #tpu.memory_space<vmem>>, vector<1x128xf32>
      tpu.vector_store %arg5[%c0_15, %c0_16], %23 {strides = array<i32>} : memref<1x128xf32, #tpu.memory_space<vmem>>, vector<1x128xf32>,
    } else {
    }
    return
  }
  func.func @transform_0(%arg0: i32, %arg1: i32) -> (i32, i32) {
    %c0_i32 = arith.constant 0 : i32
    return %arg0, %arg1 : i32, i32
  }
  func.func @transform_1(%arg0: i32, %arg1: i32) -> (i32, i32) {
    %c0_i32 = arith.constant 0 : i32
    %c0_i32_0 = arith.constant 0 : i32
    return %c0_i32, %arg1 : i32, i32
  }
  func.func @transform_2(%arg0: i32, %arg1: i32) -> (i32, i32) {
    %c0_i32 = arith.constant 0 : i32
    %c0_i32_0 = arith.constant 0 : i32
    %c0_i32_1 = arith.constant 0 : i32
    return %c0_i32, %c0_i32_0 : i32, i32
  }
  func.func @transform_3(%arg0: i32, %arg1: i32) -> (i32, i32) {
    %c0_i32 = arith.constant 0 : i32
    %c0_i32_0 = arith.constant 0 : i32
    return %c0_i32, %arg0 : i32, i32
  }
}

</mosaic_0001>

<bundles_post_ra>
// kernel: perceptron_forward.1
= control target key start
LH: loop header
LB: loop body
LE: loop exit
PB: predicated region body
PF: predicated region fallthrough
CT: control target
= control target key end

     0   :  { %9 = vsyncpa [#allocation5], 0  ;;  %s715_s0 = inlined_call_operand.hbm [shape: f32[8,32], index: 0, kind: input, shape index: {}]   ;;  %s716_s1 = inlined_call_operand.vmem [shape: f32[1,32], index: 1, kind: input, shape index: {}]   ;;  %s717_s2 = inlined_call_operand.<no memory space> [shape: f32[1,1], index: 2, kind: input, shape index: {}]   ;;  %s718_s3 = inlined_call_operand.hbm [shape: f32[1,8], index: 3, kind: output, shape index: {}]  }
   0x1   :  { %10 = vsyncpa [#allocation6], 0 }
   0x2   :  { %14 = vsyncadd [#allocation5], 1920  ;;  %s15_s14 = sshll.u32 %s715_s0, 4  ;;  %s643_s15 = smov [#allocation4]   ;;  %s16_s14 = int_to_ptr.hbm [resolvable:$true] %s15_s14 }
   0x3   :  { %s17_s16 = sshll.u32 %s643_s15, 4  ;;  %s644_s17 = smov 128   ;;  %s18_s16 = int_to_ptr.vmem [resolvable:$true] %s17_s16 }
   0x4   :  { %s645_s18 = smov 8  }
   0x5   :  { %23 = dma.hbm_to_vmem [thread:$0]  %s16_s14, 128, %s18_s16, [#allocation5], %s644_s17, %s644_s17, %s645_s18  }
   0x6   :  { %639 = dma.done.wait [#allocation5], 2048  }
   0x7   :  { %640 = vsyncadd [#allocation5], 4294965248  ;;  %v37_v0 = vld [vmem:[#allocation4] sm:$0xff]  ;;  %v586_v1 = vld [vmem:[%s716_s1] ss:$0 sm:$0xff]  ;;  %vm73_vm0 = vcmask 261120  }
   0x8   :  { %v39_v2 = vld [vmem:[#allocation4 + $0x10] sm:$0xff]  ;;  %v57_v3 = vmul.f32 %v586_v1, %v37_v0  ;;  %v41_v5 = vld [vmem:[#allocation4 + $0x20] sm:$0xff]  ;;  %v38_v6 = vld [vmem:[#allocation4 + $0x8] sm:$0xff]  ;;  %v646_v49 = vmov 0   ;;  %vm471_vm1 = vcmask 130112   ;;  %vm475_vm2 = vcmask 195712  }
   0x9   :  { %v59_v4 = vmul.f32 %v586_v1, %v39_v2  ;;  %v40_v7 = vld [vmem:[#allocation4 + $0x18] sm:$0xff]  ;;  %v61_v8 = vmul.f32 %v586_v1, %v41_v5  ;;  %v42_v11 = vld [vmem:[#allocation4 + $0x28] sm:$0xff]  ;;  %v58_v13 = vmul.f32 %v586_v1, %v38_v6  ;;  %v43_v19 = vld [vmem:[#allocation4 + $0x30] sm:$0xff]  ;;  %583 = vset.pattern.permute.xlu1 %v646_v49  ;;  %584 = vset.pattern.permute.xlu2 %v646_v49  ;;  %vm479_vm3 = vcmask 261312   ;;  %s648_s21 = smov [#allocation7]  }
   0xa   :  { %v74_v9 = vsel %vm73_vm0, %v57_v3, 0.0  ;;  %v60_v14 = vmul.f32 %v586_v1, %v40_v7  ;;  %v62_v15 = vmul.f32 %v586_v1, %v42_v11  ;;  %v44_v20 = vld [vmem:[#allocation4 + $0x38] sm:$0xff]  ;;  %v45_v21 = vld [vmem:[#allocation4 + $0x40] sm:$0xff]  ;;  %v63_v22 = vmul.f32 %v586_v1, %v43_v19  ;;  %v46_v28 = vld [vmem:[#allocation4 + $0x48] sm:$0xff]  ;;  %585 = vset.pattern.permute.xlu0 %v646_v49  ;;  %s564_s22 = sshll.u32 %s648_s21, 4  ;;  %s565_s22 = int_to_ptr.vmem [resolvable:$true] %s564_s22 }
   0xb   :  { %v80_v10 = vsel %vm73_vm0, %v59_v4, 0.0  ;;  %75 = vadd.xlane.f32.xlu0 %v74_v9  ;;  %v86_v12 = vsel %vm73_vm0, %v61_v8, 0.0  ;;  %v77_v16 = vsel %vm73_vm0, %v58_v13, 0.0  ;;  %v64_v23 = vmul.f32 %v586_v1, %v44_v20  ;;  %v47_v29 = vld [vmem:[#allocation4 + $0x50] sm:$0xff]  ;;  %v48_v30 = vld [vmem:[#allocation4 + $0x58] sm:$0xff]  ;;  %v49_v37 = vld [vmem:[#allocation4 + $0x60] sm:$0xff] }
   0xc   :  { %81 = vadd.xlane.f32.xlu1 %v80_v10  ;;  %87 = vadd.xlane.f32.xlu2 %v86_v12  ;;  %v83_v17 = vsel %vm73_vm0, %v60_v14, 0.0  ;;  %v89_v18 = vsel %vm73_vm0, %v62_v15, 0.0  ;;  %v65_v24 = vmul.f32 %v586_v1, %v45_v21  ;;  %v92_v25 = vsel %vm73_vm0, %v63_v22, 0.0  ;;  %v50_v38 = vld [vmem:[#allocation4 + $0x68] sm:$0xff]  ;;  %v51_v39 = vld [vmem:[#allocation4 + $0x70] sm:$0xff]  ;;  %v52_v46 = vld [vmem:[#allocation4 + $0x78] sm:$0xff] }
   0xd   :  { %v95_v26 = vsel %vm73_vm0, %v64_v23, 0.0  ;;  %v66_v31 = vmul.f32 %v586_v1, %v46_v28  ;;  %v67_v32 = vmul.f32 %v586_v1, %v47_v29  ;;  %v68_v33 = vmul.f32 %v586_v1, %v48_v30 }
   0xe   :  { %v98_v27 = vsel %vm73_vm0, %v65_v24, 0.0  ;;  %v69_v40 = vmul.f32 %v586_v1, %v49_v37  ;;  %v70_v41 = vmul.f32 %v586_v1, %v50_v38  ;;  %v71_v42 = vmul.f32 %v586_v1, %v51_v39 }
   0xf   :  { %v101_v34 = vsel %vm73_vm0, %v66_v31, 0.0  ;;  %v104_v35 = vsel %vm73_vm0, %v67_v32, 0.0  ;;  %v107_v36 = vsel %vm73_vm0, %v68_v33, 0.0  ;;  %v72_v47 = vmul.f32 %v586_v1, %v52_v46 }
  0x10   :  { %v110_v43 = vsel %vm73_vm0, %v69_v40, 0.0  ;;  %v113_v44 = vsel %vm73_vm0, %v70_v41, 0.0  ;;  %v116_v45 = vsel %vm73_vm0, %v71_v42, 0.0  ;;  %vm483_vm4 = vcmask 326912  }
  0x11   :  { %v119_v48 = vsel %vm73_vm0, %v72_v47, 0.0  ;;  %vm487_vm5 = vcmask 392512   ;;  %vm491_vm6 = vcmask 458112   ;;  %vm495_vm7 = vcmask 523712  }
  0x12   :  { %vm499_vm8 = vcmask 589312   ;;  %vm503_vm9 = vcmask 654912   ;;  %vm507_vm10 = vcmask 720512   ;;  %vm511_vm11 = vcmask 786112  }
  0x13   :  { %78 = vadd.xlane.f32.xlu0 %v77_v16  ;;  %vm515_vm12 = vcmask 851712   ;;  %vm519_vm13 = vcmask 917312   ;;  %vm523_vm14 = vcmask 982912   ;;  %vm527_vm15 = vcmask 1048512  }
  0x14   :  { %84 = vadd.xlane.f32.xlu1 %v83_v17  ;;  %90 = vadd.xlane.f32.xlu2 %v89_v18 }
  0x1b   :  { %93 = vadd.xlane.f32.xlu0 %v92_v25 }
  0x1c   :  { %96 = vadd.xlane.f32.xlu1 %v95_v26  ;;  %99 = vadd.xlane.f32.xlu2 %v98_v27 }
  0x23   :  { %102 = vadd.xlane.f32.xlu0 %v101_v34 }
  0x24   :  { %105 = vadd.xlane.f32.xlu1 %v104_v35  ;;  %108 = vadd.xlane.f32.xlu2 %v107_v36 }
  0x2b   :  { %111 = vadd.xlane.f32.xlu0 %v110_v43 }
  0x2c   :  { %114 = vadd.xlane.f32.xlu1 %v113_v44  ;;  %117 = vadd.xlane.f32.xlu2 %v116_v45 }
  0x33   :  { %120 = vadd.xlane.f32.xlu0 %v119_v48 }
  0x7e   :  { %v76_v50 = vpop.xlane.xlu0 %75 }
  0x7f   :  { %v139_v51 = vperm.slane %v76_v50, 0  ;;  %v140_v52 = vperm.slane %v76_v50, 1  ;;  %v141_v53 = vperm.slane %v76_v50, 2  ;;  %v142_v54 = vperm.slane %v76_v50, 3  ;;  %v82_v5 = vpop.xlane.xlu1 %81  ;;  %v88_v25 = vpop.xlane.xlu2 %87 }
  0x80   :  { %v143_v55 = vperm.slane %v76_v50, 4  ;;  %v144_v56 = vperm.slane %v76_v50, 5  ;;  %v145_v57 = vperm.slane %v76_v50, 6  ;;  %v146_v58 = vperm.slane %v76_v50, 7 }
  0x81   :  { %267 = vst [vmem:[#allocation1] ss:$9 sm:$0xff] %v139_v51  ;;  %v155_v6 = vperm.slane %v82_v5, 0  ;;  %v156_v7 = vperm.slane %v82_v5, 1  ;;  %v157_v8 = vperm.slane %v82_v5, 2  ;;  %v158_v10 = vperm.slane %v82_v5, 3 }
  0x82   :  { %269 = vst [vmem:[#allocation1 + $0x1] ss:$9 sm:$0xff] %v140_v52  ;;  %v159_v11 = vperm.slane %v82_v5, 4  ;;  %v160_v12 = vperm.slane %v82_v5, 5  ;;  %v161_v13 = vperm.slane %v82_v5, 6  ;;  %v162_v14 = vperm.slane %v82_v5, 7 }
  0x83   :  { %271 = vst [vmem:[#allocation1 + $0x2] ss:$9 sm:$0xff] %v141_v53  ;;  %v171_v26 = vperm.slane %v88_v25, 0  ;;  %v172_v27 = vperm.slane %v88_v25, 1  ;;  %v173_v28 = vperm.slane %v88_v25, 2  ;;  %v174_v30 = vperm.slane %v88_v25, 3 }
  0x84   :  { %273 = vst [vmem:[#allocation1 + $0x3] ss:$9 sm:$0xff] %v142_v54  ;;  %v175_v31 = vperm.slane %v88_v25, 4  ;;  %v176_v32 = vperm.slane %v88_v25, 5  ;;  %v177_v33 = vperm.slane %v88_v25, 6  ;;  %v178_v34 = vperm.slane %v88_v25, 7 }
  0x85   :  { %275 = vst [vmem:[#allocation1 + $0x4] ss:$9 sm:$0xff] %v143_v55 }
  0x86   :  { %277 = vst [vmem:[#allocation1 + $0x5] ss:$9 sm:$0xff] %v144_v56  ;;  %v79_v59 = vpop.xlane.xlu0 %78 }
  0x87   :  { %279 = vst [vmem:[#allocation1 + $0x6] ss:$9 sm:$0xff] %v145_v57  ;;  %v147_v60 = vperm.slane %v79_v59, 0  ;;  %v148_v61 = vperm.slane %v79_v59, 1  ;;  %v149_v62 = vperm.slane %v79_v59, 2  ;;  %v150_v0 = vperm.slane %v79_v59, 3  ;;  %v85_v15 = vpop.xlane.xlu1 %84  ;;  %v91_v35 = vpop.xlane.xlu2 %90 }
  0x88   :  { %281 = vst [vmem:[#allocation1 + $0x7] ss:$9 sm:$0xff] %v146_v58  ;;  %v151_v1 = vperm.slane %v79_v59, 4  ;;  %v152_v2 = vperm.slane %v79_v59, 5  ;;  %v153_v3 = vperm.slane %v79_v59, 6  ;;  %v154_v4 = vperm.slane %v79_v59, 7 }
  0x89   :  { %v163_v16 = vperm.slane %v85_v15, 0  ;;  %v164_v17 = vperm.slane %v85_v15, 1  ;;  %v165_v18 = vperm.slane %v85_v15, 2  ;;  %v166_v20 = vperm.slane %v85_v15, 3 }
  0x8a   :  { %v167_v21 = vperm.slane %v85_v15, 4  ;;  %v168_v22 = vperm.slane %v85_v15, 5  ;;  %v169_v23 = vperm.slane %v85_v15, 6  ;;  %v170_v24 = vperm.slane %v85_v15, 7 }
  0x8b   :  { %v179_v36 = vperm.slane %v91_v35, 0  ;;  %v180_v37 = vperm.slane %v91_v35, 1  ;;  %v181_v38 = vperm.slane %v91_v35, 2  ;;  %v182_v40 = vperm.slane %v91_v35, 3 }
  0x8c   :  { %v183_v41 = vperm.slane %v91_v35, 4  ;;  %v184_v42 = vperm.slane %v91_v35, 5  ;;  %v185_v43 = vperm.slane %v91_v35, 6  ;;  %v186_v44 = vperm.slane %v91_v35, 7 }
  0x8e   :  { %v94_v45 = vpop.xlane.xlu0 %93 }
  0x8f   :  { %v282_v63 = vld [vmem:[#allocation1] sm:$0xff]  ;;  %v187_v46 = vperm.slane %v94_v45, 0  ;;  %v188_v47 = vperm.slane %v94_v45, 1  ;;  %v189_v48 = vperm.slane %v94_v45, 2  ;;  %v190_v50 = vperm.slane %v94_v45, 3  ;;  %v97_v55 = vpop.xlane.xlu1 %96 }
  0x90   :  { %283 = vst [vmem:[#allocation1] ss:$9 sm:$0xff] %v147_v60  ;;  %419 = vperm.xlu1 %583, %v282_v63   ;;  %v191_v51 = vperm.slane %v94_v45, 4  ;;  %v192_v52 = vperm.slane %v94_v45, 5  ;;  %v193_v53 = vperm.slane %v94_v45, 6  ;;  %v194_v54 = vperm.slane %v94_v45, 7 }
  0x91   :  { %284 = vst [vmem:[#allocation1 + $0x1] ss:$9 sm:$0xff] %v148_v61  ;;  %v195_v56 = vperm.slane %v97_v55, 0  ;;  %v196_v57 = vperm.slane %v97_v55, 1  ;;  %v197_v58 = vperm.slane %v97_v55, 2  ;;  %v198_v60 = vperm.slane %v97_v55, 3 }
  0x92   :  { %285 = vst [vmem:[#allocation1 + $0x2] ss:$9 sm:$0xff] %v149_v62  ;;  %v199_v61 = vperm.slane %v97_v55, 4  ;;  %v200_v62 = vperm.slane %v97_v55, 5  ;;  %v201_v63 = vperm.slane %v97_v55, 6 }
  0x93   :  { %286 = vst [vmem:[#allocation1 + $0x3] ss:$9 sm:$0xff] %v150_v0  ;;  %v202_v0 = vperm.slane %v97_v55, 7 }
  0x94   :  { %287 = vst [vmem:[#allocation1 + $0x4] ss:$9 sm:$0xff] %v151_v1  ;;  %v100_v1 = vpop.xlane.xlu2 %99 }
  0x95   :  { %288 = vst [vmem:[#allocation1 + $0x5] ss:$9 sm:$0xff] %v152_v2  ;;  %v203_v2 = vperm.slane %v100_v1, 0 }
  0x96   :  { %289 = vst [vmem:[#allocation1 + $0x6] ss:$9 sm:$0xff] %v153_v3  ;;  %v204_v3 = vperm.slane %v100_v1, 1 }
  0x97   :  { %290 = vst [vmem:[#allocation1 + $0x7] ss:$9 sm:$0xff] %v154_v4  ;;  %v205_v4 = vperm.slane %v100_v1, 2 }
  0x9e   :  { %v291_v9 = vld [vmem:[#allocation1] sm:$0xff] }
  0x9f   :  { %292 = vst [vmem:[#allocation1] ss:$9 sm:$0xff] %v155_v6  ;;  %422 = vperm.xlu2 %584, %v291_v9   ;;  %v206_v6 = vperm.slane %v100_v1, 3  ;;  %v209_v9 = vperm.slane %v100_v1, 6 }
  0xa0   :  { %293 = vst [vmem:[#allocation1 + $0x1] ss:$9 sm:$0xff] %v156_v7  ;;  %v207_v7 = vperm.slane %v100_v1, 4 }
  0xa1   :  { %294 = vst [vmem:[#allocation1 + $0x2] ss:$9 sm:$0xff] %v157_v8  ;;  %v208_v8 = vperm.slane %v100_v1, 5 }
  0xa2   :  { %295 = vst [vmem:[#allocation1 + $0x3] ss:$9 sm:$0xff] %v158_v10  ;;  %v210_v10 = vperm.slane %v100_v1, 7 }
  0xa3   :  { %296 = vst [vmem:[#allocation1 + $0x4] ss:$9 sm:$0xff] %v159_v11  ;;  %v103_v11 = vpop.xlane.xlu0 %102 }
  0xa4   :  { %297 = vst [vmem:[#allocation1 + $0x5] ss:$9 sm:$0xff] %v160_v12  ;;  %v211_v12 = vperm.slane %v103_v11, 0 }
  0xa5   :  { %298 = vst [vmem:[#allocation1 + $0x6] ss:$9 sm:$0xff] %v161_v13  ;;  %v212_v13 = vperm.slane %v103_v11, 1 }
  0xa6   :  { %299 = vst [vmem:[#allocation1 + $0x7] ss:$9 sm:$0xff] %v162_v14  ;;  %v213_v14 = vperm.slane %v103_v11, 2 }
  0xad   :  { %v300_v19 = vld [vmem:[#allocation1] sm:$0xff] }
  0xae   :  { %301 = vst [vmem:[#allocation1] ss:$9 sm:$0xff] %v163_v16  ;;  %425 = vperm.xlu0 %585, %v300_v19   ;;  %v214_v16 = vperm.slane %v103_v11, 3  ;;  %v217_v19 = vperm.slane %v103_v11, 6 }
  0xaf   :  { %302 = vst [vmem:[#allocation1 + $0x1] ss:$9 sm:$0xff] %v164_v17  ;;  %v215_v17 = vperm.slane %v103_v11, 4 }
  0xb0   :  { %303 = vst [vmem:[#allocation1 + $0x2] ss:$9 sm:$0xff] %v165_v18  ;;  %v216_v18 = vperm.slane %v103_v11, 5 }
  0xb1   :  { %304 = vst [vmem:[#allocation1 + $0x3] ss:$9 sm:$0xff] %v166_v20  ;;  %v218_v20 = vperm.slane %v103_v11, 7 }
  0xb2   :  { %305 = vst [vmem:[#allocation1 + $0x4] ss:$9 sm:$0xff] %v167_v21  ;;  %v106_v21 = vpop.xlane.xlu1 %105 }
  0xb3   :  { %306 = vst [vmem:[#allocation1 + $0x5] ss:$9 sm:$0xff] %v168_v22  ;;  %v219_v22 = vperm.slane %v106_v21, 0 }
  0xb4   :  { %307 = vst [vmem:[#allocation1 + $0x6] ss:$9 sm:$0xff] %v169_v23  ;;  %v220_v23 = vperm.slane %v106_v21, 1 }
  0xb5   :  { %308 = vst [vmem:[#allocation1 + $0x7] ss:$9 sm:$0xff] %v170_v24  ;;  %v221_v24 = vperm.slane %v106_v21, 2 }
  0xbc   :  { %v309_v29 = vld [vmem:[#allocation1] sm:$0xff] }
  0xbd   :  { %310 = vst [vmem:[#allocation1] ss:$9 sm:$0xff] %v171_v26  ;;  %428 = vperm.xlu2 %584, %v309_v29   ;;  %v222_v26 = vperm.slane %v106_v21, 3  ;;  %v225_v29 = vperm.slane %v106_v21, 6 }
  0xbe   :  { %311 = vst [vmem:[#allocation1 + $0x1] ss:$9 sm:$0xff] %v172_v27  ;;  %v223_v27 = vperm.slane %v106_v21, 4 }
  0xbf   :  { %312 = vst [vmem:[#allocation1 + $0x2] ss:$9 sm:$0xff] %v173_v28  ;;  %v224_v28 = vperm.slane %v106_v21, 5 }
  0xc0   :  { %313 = vst [vmem:[#allocation1 + $0x3] ss:$9 sm:$0xff] %v174_v30  ;;  %v226_v30 = vperm.slane %v106_v21, 7 }
  0xc1   :  { %314 = vst [vmem:[#allocation1 + $0x4] ss:$9 sm:$0xff] %v175_v31  ;;  %v109_v31 = vpop.xlane.xlu2 %108 }
  0xc2   :  { %315 = vst [vmem:[#allocation1 + $0x5] ss:$9 sm:$0xff] %v176_v32  ;;  %v227_v32 = vperm.slane %v109_v31, 0 }
  0xc3   :  { %316 = vst [vmem:[#allocation1 + $0x6] ss:$9 sm:$0xff] %v177_v33  ;;  %v228_v33 = vperm.slane %v109_v31, 1 }
  0xc4   :  { %317 = vst [vmem:[#allocation1 + $0x7] ss:$9 sm:$0xff] %v178_v34  ;;  %v229_v34 = vperm.slane %v109_v31, 2 }
  0xcb   :  { %v318_v39 = vld [vmem:[#allocation1] sm:$0xff] }
  0xcc   :  { %319 = vst [vmem:[#allocation1] ss:$9 sm:$0xff] %v179_v36  ;;  %431 = vperm.xlu1 %583, %v318_v39   ;;  %v230_v36 = vperm.slane %v109_v31, 3  ;;  %v233_v39 = vperm.slane %v109_v31, 6 }
  0xcd   :  { %320 = vst [vmem:[#allocation1 + $0x1] ss:$9 sm:$0xff] %v180_v37  ;;  %v231_v37 = vperm.slane %v109_v31, 4 }
  0xce   :  { %321 = vst [vmem:[#allocation1 + $0x2] ss:$9 sm:$0xff] %v181_v38  ;;  %v232_v38 = vperm.slane %v109_v31, 5 }
  0xcf   :  { %322 = vst [vmem:[#allocation1 + $0x3] ss:$9 sm:$0xff] %v182_v40  ;;  %v234_v40 = vperm.slane %v109_v31, 7 }
  0xd0   :  { %323 = vst [vmem:[#allocation1 + $0x4] ss:$9 sm:$0xff] %v183_v41  ;;  %v112_v41 = vpop.xlane.xlu0 %111 }
  0xd1   :  { %324 = vst [vmem:[#allocation1 + $0x5] ss:$9 sm:$0xff] %v184_v42  ;;  %v235_v42 = vperm.slane %v112_v41, 0 }
  0xd2   :  { %325 = vst [vmem:[#allocation1 + $0x6] ss:$9 sm:$0xff] %v185_v43  ;;  %v236_v43 = vperm.slane %v112_v41, 1 }
  0xd3   :  { %326 = vst [vmem:[#allocation1 + $0x7] ss:$9 sm:$0xff] %v186_v44  ;;  %v237_v44 = vperm.slane %v112_v41, 2 }
  0xda   :  { %v327_v49 = vld [vmem:[#allocation1] sm:$0xff] }
  0xdb   :  { %328 = vst [vmem:[#allocation1] ss:$9 sm:$0xff] %v187_v46  ;;  %434 = vperm.xlu2 %584, %v327_v49   ;;  %v238_v46 = vperm.slane %v112_v41, 3  ;;  %v241_v49 = vperm.slane %v112_v41, 6 }
  0xdc   :  { %329 = vst [vmem:[#allocation1 + $0x1] ss:$9 sm:$0xff] %v188_v47  ;;  %v239_v47 = vperm.slane %v112_v41, 4 }
  0xdd   :  { %330 = vst [vmem:[#allocation1 + $0x2] ss:$9 sm:$0xff] %v189_v48  ;;  %v240_v48 = vperm.slane %v112_v41, 5 }
  0xde   :  { %331 = vst [vmem:[#allocation1 + $0x3] ss:$9 sm:$0xff] %v190_v50  ;;  %v242_v50 = vperm.slane %v112_v41, 7 }
  0xdf   :  { %332 = vst [vmem:[#allocation1 + $0x4] ss:$9 sm:$0xff] %v191_v51  ;;  %v115_v51 = vpop.xlane.xlu1 %114 }
  0xe0   :  { %333 = vst [vmem:[#allocation1 + $0x5] ss:$9 sm:$0xff] %v192_v52  ;;  %v243_v52 = vperm.slane %v115_v51, 0  ;;  %v246_v55 = vperm.slane %v115_v51, 3 }
  0xe1   :  { %334 = vst [vmem:[#allocation1 + $0x6] ss:$9 sm:$0xff] %v193_v53  ;;  %v244_v53 = vperm.slane %v115_v51, 1 }
  0xe2   :  { %335 = vst [vmem:[#allocation1 + $0x7] ss:$9 sm:$0xff] %v194_v54  ;;  %v245_v54 = vperm.slane %v115_v51, 2 }
  0xe9   :  { %v336_v59 = vld [vmem:[#allocation1] sm:$0xff] }
  0xea   :  { %337 = vst [vmem:[#allocation1] ss:$9 sm:$0xff] %v195_v56  ;;  %437 = vperm.xlu1 %583, %v336_v59   ;;  %v249_v59 = vperm.slane %v115_v51, 6 }
  0xeb   :  { %338 = vst [vmem:[#allocation1 + $0x1] ss:$9 sm:$0xff] %v196_v57  ;;  %v247_v57 = vperm.slane %v115_v51, 4 }
  0xec   :  { %339 = vst [vmem:[#allocation1 + $0x2] ss:$9 sm:$0xff] %v197_v58  ;;  %v248_v58 = vperm.slane %v115_v51, 5 }
  0xed   :  { %340 = vst [vmem:[#allocation1 + $0x3] ss:$9 sm:$0xff] %v198_v60  ;;  %v250_v60 = vperm.slane %v115_v51, 7 }
  0xee   :  { %341 = vst [vmem:[#allocation1 + $0x4] ss:$9 sm:$0xff] %v199_v61  ;;  %v118_v61 = vpop.xlane.xlu2 %117 }
  0xef   :  { %342 = vst [vmem:[#allocation1 + $0x5] ss:$9 sm:$0xff] %v200_v62  ;;  %v251_v62 = vperm.slane %v118_v61, 0  ;;  %v254_v1 = vperm.slane %v118_v61, 3 }
  0xf0   :  { %343 = vst [vmem:[#allocation1 + $0x6] ss:$9 sm:$0xff] %v201_v63  ;;  %v252_v63 = vperm.slane %v118_v61, 1 }
  0xf1   :  { %344 = vst [vmem:[#allocation1 + $0x7] ss:$9 sm:$0xff] %v202_v0  ;;  %v253_v0 = vperm.slane %v118_v61, 2 }
  0xf8   :  { %v345_v5 = vld [vmem:[#allocation1] sm:$0xff] }
  0xf9   :  { %346 = vst [vmem:[#allocation1] ss:$9 sm:$0xff] %v203_v2  ;;  %440 = vperm.xlu2 %584, %v345_v5   ;;  %v257_v5 = vperm.slane %v118_v61, 6 }
  0xfa   :  { %347 = vst [vmem:[#allocation1 + $0x1] ss:$9 sm:$0xff] %v204_v3  ;;  %v255_v3 = vperm.slane %v118_v61, 4 }
  0xfb   :  { %348 = vst [vmem:[#allocation1 + $0x2] ss:$9 sm:$0xff] %v205_v4  ;;  %v256_v4 = vperm.slane %v118_v61, 5 }
  0xfc   :  { %349 = vst [vmem:[#allocation1 + $0x3] ss:$9 sm:$0xff] %v206_v6  ;;  %v258_v6 = vperm.slane %v118_v61, 7 }
  0xfd   :  { %350 = vst [vmem:[#allocation1 + $0x4] ss:$9 sm:$0xff] %v207_v7  ;;  %v121_v7 = vpop.xlane.xlu0 %120 }
  0xfe   :  { %351 = vst [vmem:[#allocation1 + $0x5] ss:$9 sm:$0xff] %v208_v8  ;;  %v259_v8 = vperm.slane %v121_v7, 0  ;;  %v262_v11 = vperm.slane %v121_v7, 3 }
  0xff   :  { %352 = vst [vmem:[#allocation1 + $0x6] ss:$9 sm:$0xff] %v209_v9  ;;  %v260_v9 = vperm.slane %v121_v7, 1 }
 0x100   :  { %353 = vst [vmem:[#allocation1 + $0x7] ss:$9 sm:$0xff] %v210_v10  ;;  %v261_v10 = vperm.slane %v121_v7, 2 }
 0x107   :  { %v354_v15 = vld [vmem:[#allocation1] sm:$0xff] }
 0x108   :  { %355 = vst [vmem:[#allocation1] ss:$9 sm:$0xff] %v211_v12  ;;  %443 = vperm.xlu1 %583, %v354_v15   ;;  %v265_v15 = vperm.slane %v121_v7, 6 }
 0x109   :  { %356 = vst [vmem:[#allocation1 + $0x1] ss:$9 sm:$0xff] %v212_v13  ;;  %v263_v13 = vperm.slane %v121_v7, 4 }
 0x10a   :  { %357 = vst [vmem:[#allocation1 + $0x2] ss:$9 sm:$0xff] %v213_v14  ;;  %v264_v14 = vperm.slane %v121_v7, 5 }
 0x10b   :  { %358 = vst [vmem:[#allocation1 + $0x3] ss:$9 sm:$0xff] %v214_v16  ;;  %v266_v16 = vperm.slane %v121_v7, 7 }
 0x10c   :  { %359 = vst [vmem:[#allocation1 + $0x4] ss:$9 sm:$0xff] %v215_v17 }
 0x10d   :  { %360 = vst [vmem:[#allocation1 + $0x5] ss:$9 sm:$0xff] %v216_v18  ;;  %v420_v18 = vpop.permute.xlu1 %419 }
 0x10e   :  { %361 = vst [vmem:[#allocation1 + $0x6] ss:$9 sm:$0xff] %v217_v19  ;;  %v423_v19 = vpop.permute.xlu2 %422 }
 0x10f   :  { %362 = vst [vmem:[#allocation1 + $0x7] ss:$9 sm:$0xff] %v218_v20  ;;  %v647_v20 = vmov 0.0  }
 0x110   :  { %36 = vst [vmem:[#allocation2] sm:$0x1] %v647_v20 }
 0x116   :  { %v363_v25 = vld [vmem:[#allocation1] sm:$0xff] }
 0x117   :  { %364 = vst [vmem:[#allocation1] ss:$9 sm:$0xff] %v219_v22  ;;  %446 = vperm.xlu0 %585, %v363_v25   ;;  %v429_v22 = vpop.permute.xlu2 %428 }
 0x118   :  { %365 = vst [vmem:[#allocation1 + $0x1] ss:$9 sm:$0xff] %v220_v23  ;;  %v466_v23 = vlaneseq }
 0x119   :  { %366 = vst [vmem:[#allocation1 + $0x2] ss:$9 sm:$0xff] %v221_v24 }
 0x11a   :  { %367 = vst [vmem:[#allocation1 + $0x3] ss:$9 sm:$0xff] %v222_v26  ;;  %v691_v24 = vand.u32 127, %v466_v23 }
 0x11b   :  { %368 = vst [vmem:[#allocation1 + $0x4] ss:$9 sm:$0xff] %v223_v27 }
 0x11c   :  { %369 = vst [vmem:[#allocation1 + $0x5] ss:$9 sm:$0xff] %v224_v28  ;;  %v473_v27 = vadd.s32 4294967280, %v691_v24  ;;  %v469_v28 = vadd.s32 4294967288, %v691_v24 }
 0x11d   :  { %370 = vst [vmem:[#allocation1 + $0x6] ss:$9 sm:$0xff] %v225_v29 }
 0x11e   :  { %371 = vst [vmem:[#allocation1 + $0x7] ss:$9 sm:$0xff] %v226_v30  ;;  %v468_v30 = vperm.slane %v420_v18, %v691_v24 }
 0x120   :  { %v426_v29 = vpop.permute.xlu0 %425 }
 0x121   :  { %v474_v31 = vperm.slane %v426_v29, %v473_v27 }
 0x125   :  { %v372_v35 = vld [vmem:[#allocation1] sm:$0xff] }
 0x126   :  { %373 = vst [vmem:[#allocation1] ss:$9 sm:$0xff] %v227_v32  ;;  %449 = vperm.xlu2 %584, %v372_v35   ;;  %v481_v32 = vadd.s32 4294967264, %v691_v24 }
 0x127   :  { %374 = vst [vmem:[#allocation1 + $0x1] ss:$9 sm:$0xff] %v228_v33  ;;  %v470_v33 = vperm.slane %v423_v19, %v469_v28 }
 0x128   :  { %375 = vst [vmem:[#allocation1 + $0x2] ss:$9 sm:$0xff] %v229_v34  ;;  %v477_v34 = vadd.s32 4294967272, %v691_v24 }
 0x129   :  { %376 = vst [vmem:[#allocation1 + $0x3] ss:$9 sm:$0xff] %v230_v36  ;;  %v472_v35 = vsel %vm471_vm1, %v470_v33, %v468_v30 }
 0x12a   :  { %377 = vst [vmem:[#allocation1 + $0x4] ss:$9 sm:$0xff] %v231_v37  ;;  %v476_v37 = vsel %vm475_vm2, %v474_v31, %v472_v35  ;;  %v478_v41 = vperm.slane %v429_v22, %v477_v34 }
 0x12b   :  { %378 = vst [vmem:[#allocation1 + $0x5] ss:$9 sm:$0xff] %v232_v38 }
 0x12c   :  { %379 = vst [vmem:[#allocation1 + $0x6] ss:$9 sm:$0xff] %v233_v39 }
 0x12d   :  { %380 = vst [vmem:[#allocation1 + $0x7] ss:$9 sm:$0xff] %v234_v40  ;;  %v489_v40 = vadd.s32 4294967248, %v691_v24 }
 0x134   :  { %v381_v45 = vld [vmem:[#allocation1] sm:$0xff] }
 0x135   :  { %382 = vst [vmem:[#allocation1] ss:$9 sm:$0xff] %v235_v42  ;;  %452 = vperm.xlu1 %583, %v381_v45   ;;  %v435_v26 = vpop.permute.xlu2 %434  ;;  %v485_v42 = vadd.s32 4294967256, %v691_v24 }
 0x136   :  { %383 = vst [vmem:[#allocation1 + $0x1] ss:$9 sm:$0xff] %v236_v43  ;;  %v480_v43 = vsel %vm479_vm3, %v478_v41, %v476_v37 }
 0x137   :  { %384 = vst [vmem:[#allocation1 + $0x2] ss:$9 sm:$0xff] %v237_v44 }
 0x138   :  { %385 = vst [vmem:[#allocation1 + $0x3] ss:$9 sm:$0xff] %v238_v46 }
 0x139   :  { %386 = vst [vmem:[#allocation1 + $0x4] ss:$9 sm:$0xff] %v239_v47  ;;  %v497_v47 = vadd.s32 4294967232, %v691_v24 }
 0x13a   :  { %387 = vst [vmem:[#allocation1 + $0x5] ss:$9 sm:$0xff] %v240_v48  ;;  %v486_v48 = vperm.slane %v435_v26, %v485_v42 }
 0x13b   :  { %388 = vst [vmem:[#allocation1 + $0x6] ss:$9 sm:$0xff] %v241_v49  ;;  %v493_v49 = vadd.s32 4294967240, %v691_v24 }
 0x13c   :  { %389 = vst [vmem:[#allocation1 + $0x7] ss:$9 sm:$0xff] %v242_v50  ;;  %v501_v50 = vadd.s32 4294967224, %v691_v24 }
 0x13e   :  { %v432_v21 = vpop.permute.xlu1 %431 }
 0x13f   :  { %v482_v38 = vperm.slane %v432_v21, %v481_v32  ;;  %v537_v21 = vstv %s717_s2  ;;  %s566_s2 = sshll.u32 %s718_s3, 4  ;;  %s567_s2 = int_to_ptr.hbm [resolvable:$true] %s566_s2 }
 0x141   :  { %v484_v45 = vsel %vm483_vm4, %v482_v38, %v480_v43 }
 0x142   :  { %v488_v51 = vsel %vm487_vm5, %v486_v48, %v484_v45 }
 0x143   :  { %v390_v56 = vld [vmem:[#allocation1] sm:$0xff] }
 0x144   :  { %455 = vperm.xlu0 %585, %v390_v56   ;;  %391 = vst [vmem:[#allocation1] ss:$9 sm:$0xff] %v243_v52 }
 0x145   :  { %392 = vst [vmem:[#allocation1 + $0x1] ss:$9 sm:$0xff] %v244_v53 }
 0x146   :  { %393 = vst [vmem:[#allocation1 + $0x2] ss:$9 sm:$0xff] %v245_v54 }
 0x147   :  { %394 = vst [vmem:[#allocation1 + $0x3] ss:$9 sm:$0xff] %v246_v55 }
 0x148   :  { %395 = vst [vmem:[#allocation1 + $0x4] ss:$9 sm:$0xff] %v247_v57 }
 0x149   :  { %396 = vst [vmem:[#allocation1 + $0x5] ss:$9 sm:$0xff] %v248_v58  ;;  %v509_v58 = vadd.s32 4294967208, %v691_v24 }
 0x14a   :  { %397 = vst [vmem:[#allocation1 + $0x6] ss:$9 sm:$0xff] %v249_v59  ;;  %v505_v59 = vadd.s32 4294967216, %v691_v24 }
 0x14b   :  { %398 = vst [vmem:[#allocation1 + $0x7] ss:$9 sm:$0xff] %v250_v60  ;;  %v513_v60 = vadd.s32 4294967200, %v691_v24 }
 0x152   :  { %v399_v2 = vld [vmem:[#allocation1] sm:$0xff] }
 0x153   :  { %458 = vperm.xlu2 %584, %v399_v2   ;;  %400 = vst [vmem:[#allocation1] ss:$9 sm:$0xff] %v251_v62  ;;  %v441_v39 = vpop.permute.xlu2 %440 }
 0x154   :  { %401 = vst [vmem:[#allocation1 + $0x1] ss:$9 sm:$0xff] %v252_v63  ;;  %v494_v56 = vperm.slane %v441_v39, %v493_v49 }
 0x155   :  { %402 = vst [vmem:[#allocation1 + $0x2] ss:$9 sm:$0xff] %v253_v0 }
 0x156   :  { %403 = vst [vmem:[#allocation1 + $0x3] ss:$9 sm:$0xff] %v254_v1 }
 0x157   :  { %404 = vst [vmem:[#allocation1 + $0x4] ss:$9 sm:$0xff] %v255_v3 }
 0x158   :  { %405 = vst [vmem:[#allocation1 + $0x5] ss:$9 sm:$0xff] %v256_v4  ;;  %v521_v4 = vadd.s32 4294967184, %v691_v24 }
 0x159   :  { %406 = vst [vmem:[#allocation1 + $0x6] ss:$9 sm:$0xff] %v257_v5  ;;  %v517_v5 = vadd.s32 4294967192, %v691_v24 }
 0x15a   :  { %407 = vst [vmem:[#allocation1 + $0x7] ss:$9 sm:$0xff] %v258_v6 }
 0x15c   :  { %v438_v25 = vpop.permute.xlu1 %437 }
 0x15d   :  { %v490_v46 = vperm.slane %v438_v25, %v489_v40 }
 0x15f   :  { %v492_v53 = vsel %vm491_vm6, %v490_v46, %v488_v51 }
 0x160   :  { %v496_v61 = vsel %vm495_vm7, %v494_v56, %v492_v53 }
 0x161   :  { %v408_v12 = vld [vmem:[#allocation1] sm:$0xff] }
 0x162   :  { %461 = vperm.xlu1 %583, %v408_v12   ;;  %409 = vst [vmem:[#allocation1] ss:$9 sm:$0xff] %v259_v8 }
 0x163   :  { %410 = vst [vmem:[#allocation1 + $0x1] ss:$9 sm:$0xff] %v260_v9 }
 0x164   :  { %411 = vst [vmem:[#allocation1 + $0x2] ss:$9 sm:$0xff] %v261_v10  ;;  %v525_v10 = vadd.s32 4294967176, %v691_v24 }
 0x165   :  { %412 = vst [vmem:[#allocation1 + $0x3] ss:$9 sm:$0xff] %v262_v11 }
 0x166   :  { %413 = vst [vmem:[#allocation1 + $0x4] ss:$9 sm:$0xff] %v263_v13 }
 0x167   :  { %414 = vst [vmem:[#allocation1 + $0x5] ss:$9 sm:$0xff] %v264_v14 }
 0x168   :  { %415 = vst [vmem:[#allocation1 + $0x6] ss:$9 sm:$0xff] %v265_v15 }
 0x169   :  { %416 = vst [vmem:[#allocation1 + $0x7] ss:$9 sm:$0xff] %v266_v16  ;;  %v122_v16 = vld [vmem:[#allocation2] sm:$0x1] }
 0x170   :  { %v417_v17 = vld [vmem:[#allocation1] sm:$0xff] }
 0x171   :  { %464 = vperm.xlu0 %585, %v417_v17  }
 0x17a   :  { %v444_v36 = vpop.permute.xlu1 %443 }
 0x17b   :  { %v498_v55 = vperm.slane %v444_v36, %v497_v47 }
 0x17d   :  { %v500_v63 = vsel %vm499_vm8, %v498_v55, %v496_v61 }
 0x180   :  { %v450_v54 = vpop.permute.xlu2 %449 }
 0x181   :  { %v506_v2 = vperm.slane %v450_v54, %v505_v59 }
 0x189   :  { %v447_v44 = vpop.permute.xlu0 %446 }
 0x18a   :  { %v502_v57 = vperm.slane %v447_v44, %v501_v50 }
 0x18c   :  { %v504_v0 = vsel %vm503_vm9, %v502_v57, %v500_v63 }
 0x18d   :  { %v508_v8 = vsel %vm507_vm10, %v506_v2, %v504_v0 }
 0x1a7   :  { %v453_v52 = vpop.permute.xlu1 %452 }
 0x1a8   :  { %v510_v1 = vperm.slane %v453_v52, %v509_v58 }
 0x1aa   :  { %v512_v9 = vsel %vm511_vm11, %v510_v1, %v508_v8 }
 0x1ad   :  { %v459_v7 = vpop.permute.xlu2 %458 }
 0x1ae   :  { %v518_v13 = vperm.slane %v459_v7, %v517_v5 }
 0x1b6   :  { %v456_v62 = vpop.permute.xlu0 %455 }
 0x1b7   :  { %v514_v3 = vperm.slane %v456_v62, %v513_v60 }
 0x1b9   :  { %v516_v11 = vsel %vm515_vm12, %v514_v3, %v512_v9 }
 0x1ba   :  { %v520_v15 = vsel %vm519_vm13, %v518_v13, %v516_v11 }
 0x1d4   :  { %v462_v6 = vpop.permute.xlu1 %461 }
 0x1d5   :  { %v522_v12 = vperm.slane %v462_v6, %v521_v4 }
 0x1d7   :  { %v524_v18 = vsel %vm523_vm14, %v522_v12, %v520_v15 }
 0x1e3   :  { %v465_v14 = vpop.permute.xlu0 %464 }
 0x1e4   :  { %v526_v17 = vperm.slane %v465_v14, %v525_v10 }
 0x1e6   :  { %v528_v19 = vsel %vm527_vm15, %v526_v17, %v524_v18 }
 0x1e7   :  { %v530_v20 = vadd.f32 %v528_v19, %v122_v16 }
 0x1e9   :  { %531 = vst [vmem:[#allocation2] sm:$0x1] %v530_v20 }
 0x1f0   :  { %v535_v22 = vld [vmem:[#allocation2] sm:$0x1] }
 0x1f1   :  { %v538_v23 = vadd.f32 %v537_v21, %v535_v22 }
 0x1f3   :  { %v576_v24 = vmul.f32 -1.442695, %v538_v23 }
 0x1f5   :  { %587 = vpow2.f32 %v576_v24 }
 0x1fb   :  { %v588_v25 = vpop.eup %587 }
 0x1fc   :  { %v542_v26 = vadd.f32 1.0, %v588_v25 }
 0x1fe   :  { %589 = vrcp.f32 %v542_v26  ;;  %v554_v30 = vand.u32 2147483648, %v542_v26  ;;  %v552_v32 = vand.u32 2147483647, %v542_v26  ;;  %vm548_vm1 = vweird.f32 %v542_v26 }
 0x200   :  { %v555_v34 = vor.u32 1.1754944e-38, %v554_v30  ;;  %vm553_vm3 = vcmp.eq.f32.partialorder %v552_v32, 8.507059e+37 }
 0x204   :  { %v590_v27 = vpop.eup %589 }
 0x205   :  { %v544_v28 = vmul.f32 %v590_v27, %v542_v26  ;;  %vm549_vm0 = vweird.f32 %v590_v27 }
 0x206   :  { %vm550_vm2 = vmor %vm548_vm1, %vm549_vm0 }
 0x207   :  { %v545_v29 = vsub.f32 1.0, %v544_v28 }
 0x209   :  { %v546_v31 = vmul.f32 %v590_v27, %v545_v29 }
 0x20b   :  { %v547_v33 = vadd.f32 %v590_v27, %v546_v31 }
 0x20d   :  { %v551_v35 = vsel %vm550_vm2, %v590_v27, %v547_v33 }
 0x20e   :  { %v556_v36 = vsel %vm553_vm3, %v555_v34, %v551_v35 }
 0x20f   :  { %558 = vst [vmem:[#allocation7] sm:$0x1] %v556_v36 }
 0x210   :  { %569 = dma.vmem_to_hbm [thread:$0]  %s565_s22, 16, %s567_s2, [#allocation6]  }
 0x211   :  { %641 = dma.done.wait [#allocation6], 16  }
 0x212   :  { %642 = vsyncadd [#allocation6], 4294967280 }
 0x213   :  { %574 = vsyncpa [#allocation5], 1 }
 0x214   :  { %575 = vsyncpa [#allocation6], 1 }

</bundles_post_ra>
